<compile_context>
chip_gen: v6e
topology: v6e:2x2x1
jax: 0.10.0
libtpu: 0.0.40
codegen_flags: <defaults>
</compile_context>

<pallas_src>
import numpy as np
import jax
import jax.numpy as jnp
from jax.experimental import pallas as pl
from jax.experimental.pallas import tpu as pltpu


def make_trend_basis_tables(backcast_size: int, forecast_size: int,
                            num_in_feats: int, num_out_feats: int):
    """Deterministic buffer construction, mirroring TrendBasis._init_t."""
    actual_backcast = backcast_size // num_in_feats
    actual_forecast = forecast_size // num_out_feats
    backcast_T, forecast_T = [], []
    for i in range(3):  # NOTE: the PyTorch code hardcodes range(3), not degree+1
        bt = np.power(np.arange(actual_backcast, dtype=np.float32) / actual_backcast, i)
        bt = np.concatenate([bt for _ in range(num_in_feats)])
        backcast_T.append(bt[None, :])
        ft = np.power(np.arange(actual_forecast, dtype=np.float32) / actual_forecast, i)
        ft = np.concatenate([ft for _ in range(num_out_feats)])
        forecast_T.append(ft[None, :])
    return (jnp.asarray(np.concatenate(backcast_T)),   # (3, backcast_size)
            jnp.asarray(np.concatenate(forecast_T)))   # (3, forecast_size)


def _trend_basis_kernel(x_ref, bsum_ref, fsum_ref, back_ref, fore_ref):
    # Pure VPU work: load a (TM, D) activation tile once, slice on-chip, multiply by
    # the pre-summed basis rows (broadcast over the batch rows), store final shapes.
    D = x_ref.shape[-1]
    B = back_ref.shape[-1]
    F = fore_ref.shape[-1]
    x = x_ref[...].astype(jnp.float32)               # (TM, D)
    bsum = bsum_ref[...]                             # (8, B) sublane-replicated constant
    fsum = fsum_ref[...]                             # (8, F)
    back_ref[...] = (x[:, :B] * bsum[0:1, :]).astype(back_ref.dtype)
    fore_ref[...] = (x[:, D - F:] * fsum[0:1, :]).astype(fore_ref.dtype)


def _round_up(x: int, m: int) -> int:
    return ((x + m - 1) // m) * m


def trend_basis_forward(mb_feats: jnp.ndarray,
                        backcast_T: jnp.ndarray,
                        forecast_T: jnp.ndarray,
                        backcast_size: int,
                        forecast_size: int,
                        *,
                        tm_max: int = 2048):
    N, D = mb_feats.shape
    B, F = int(backcast_size), int(forecast_size)
    assert B <= D and F <= D, "slices [:backcast_size] / [-forecast_size:] need B,F <= feat dim"

    out_dtype = jnp.promote_types(mb_feats.dtype, jnp.float32)

    # ---- tiny constant-sized prep (basis pre-sum + 8-sublane replication) ----
    bsum = jnp.sum(backcast_T.astype(jnp.float32), axis=0)        # (B,)
    fsum = jnp.sum(forecast_T.astype(jnp.float32), axis=0)        # (F,)
    bsum8 = jnp.tile(bsum[None, :], (8, 1))                       # (8, B)
    fsum8 = jnp.tile(fsum[None, :], (8, 1))                       # (8, F)

    # ---- VMEM budget -> tile rows (TM) ----
    try:
        vmem_cap = int(pltpu.get_tpu_info().vmem_capacity_bytes)
    except Exception:
        vmem_cap = 64 * 1024 * 1024                               # conservative fallback
    vmem_limit = int(min(96 * 1024 * 1024, max(32 * 1024 * 1024, vmem_cap // 2)))
    pipeline_budget = (vmem_limit * 3) // 4                       # headroom for scratch/etc.

    in_itemsize = jnp.dtype(mb_feats.dtype).itemsize
    out_itemsize = jnp.dtype(out_dtype).itemsize
    per_row_bytes = 2 * (in_itemsize * D + out_itemsize * (B + F))  # double-buffered in+outs
    tm_budget = max(8, pipeline_budget // max(per_row_bytes, 1))

    if N <= 8:
        TM = N                                                    # single tiny block
    else:
        TM = max(8, min(tm_max, (tm_budget // 8) * 8, _round_up(N, 8)))
        if pl.cdiv(N, TM) < 2:
            # >=2 grid steps so the "parallel" axis can shard across v7x's two TCs.
            TM = max(8, _round_up(pl.cdiv(N, 2), 8))

    grid = (pl.cdiv(N, TM),)

    cost = pl.CostEstimate(
        flops=N * (B + F),
        transcendentals=0,
        bytes_accessed=N * D * in_itemsize + N * (B + F) * out_itemsize + 8 * (B + F) * 4,
    )

    backcast, forecast = pl.pallas_call(
        _trend_basis_kernel,
        out_shape=(jax.ShapeDtypeStruct((N, B), out_dtype),
                   jax.ShapeDtypeStruct((N, F), out_dtype)),
        grid=grid,
        in_specs=[
            pl.BlockSpec((TM, D), lambda i: (i, 0)),   # streamed activation tile (one HBM pass)
            pl.BlockSpec((8, B), lambda i: (0, 0)),    # pre-summed backcast basis (tiny, resident)
            pl.BlockSpec((8, F), lambda i: (0, 0)),    # pre-summed forecast basis (tiny, resident)
        ],
        out_specs=(
            pl.BlockSpec((TM, B), lambda i: (i, 0)),   # final-shape backcast, no unpack pass
            pl.BlockSpec((TM, F), lambda i: (i, 0)),   # final-shape forecast, no unpack pass
        ),
        compiler_params=pltpu.CompilerParams(
            dimension_semantics=("parallel",),
            vmem_limit_bytes=vmem_limit,
        ),
        cost_estimate=cost,
    )(mb_feats, bsum8, fsum8)

    return backcast, forecast


if __name__ == "__main__":
    # Module config (small, consistent with the forward semantics):
    backcast_size = 16
    forecast_size = 8
    num_in_feats = 2
    num_out_feats = 2
    batch = 64
    feat_dim = 16  # mb_feats feature dim; slices [:backcast_size] and [-forecast_size:]

    backcast_T, forecast_T = make_trend_basis_tables(
        backcast_size, forecast_size, num_in_feats, num_out_feats)

    key = jax.random.PRNGKey(0)
    mb_feats = jax.random.normal(key, (batch, feat_dim), dtype=jnp.float32)

    backcast, forecast = trend_basis_forward(
        mb_feats, backcast_T, forecast_T, backcast_size, forecast_size)
    jax.block_until_ready((backcast, forecast))

    # Pure-JAX reference of the exact PyTorch semantics (multiply-then-sum order).
    ref_back = (mb_feats[:, None, :backcast_size] * backcast_T[None]).sum(1)
    ref_fore = (mb_feats[:, None, feat_dim - forecast_size:] * forecast_T[None]).sum(1)

    np.testing.assert_allclose(np.asarray(backcast), np.asarray(ref_back),
                               rtol=1e-5, atol=1e-5)
    np.testing.assert_allclose(np.asarray(forecast), np.asarray(ref_fore),
                               rtol=1e-5, atol=1e-5)
    print("KERNEL_OK")
</pallas_src>

<mosaic_0001>
module attributes {stable_mosaic.version = 11 : i64} {
  func.func @_trend_basis_kernel(%arg0: i32, %arg1: memref<32x16xf32, #tpu.memory_space<vmem>>, %arg2: memref<8x16xf32, #tpu.memory_space<vmem>>, %arg3: memref<8x8xf32, #tpu.memory_space<vmem>>, %arg4: memref<32x16xf32, #tpu.memory_space<vmem>>, %arg5: memref<32x8xf32, #tpu.memory_space<vmem>>) attributes {dimension_semantics = [#tpu.dimension_semantics<parallel>], iteration_bounds = array<i64: 2>, scalar_prefetch = 0 : i64, scratch_operands = 0 : i64, tpu.core_type = #tpu.core_type<tc>, window_params = [{transform_indices = @transform_0, window_bounds = array<i64: 32, 16>}, {pipeline_mode = #tpu.pipeline_mode<synchronous>, transform_indices = @transform_1, window_bounds = array<i64: 8, 16>}, {pipeline_mode = #tpu.pipeline_mode<synchronous>, transform_indices = @transform_2, window_bounds = array<i64: 8, 8>}, {transform_indices = @transform_3, window_bounds = array<i64: 32, 16>}, {transform_indices = @transform_4, window_bounds = array<i64: 32, 8>}]} {
    %c0 = arith.constant 0 : index
    %c0_0 = arith.constant 0 : index
    %0 = vector.load %arg1[%c0, %c0_0] : memref<32x16xf32, #tpu.memory_space<vmem>>, vector<32x16xf32>
    %c0_1 = arith.constant 0 : index
    %c0_2 = arith.constant 0 : index
    %1 = vector.load %arg2[%c0_1, %c0_2] : memref<8x16xf32, #tpu.memory_space<vmem>>, vector<8x16xf32>
    %c0_3 = arith.constant 0 : index
    %c0_4 = arith.constant 0 : index
    %2 = vector.load %arg3[%c0_3, %c0_4] : memref<8x8xf32, #tpu.memory_space<vmem>>, vector<8x8xf32>
    %3 = vector.extract_strided_slice %1 {offsets = [0, 0], sizes = [1, 16], strides = [1, 1]} : vector<8x16xf32> to vector<1x16xf32>
    %4 = vector.broadcast %3 : vector<1x16xf32> to vector<32x16xf32>
    %5 = arith.mulf %0, %4 : vector<32x16xf32>
    %c0_5 = arith.constant 0 : index
    %c0_6 = arith.constant 0 : index
    %6 = vector.load %arg4[%c0_5, %c0_6] : memref<32x16xf32, #tpu.memory_space<vmem>>, vector<32x16xf32>
    tpu.vector_store %arg4[%c0_5, %c0_6], %5 {strides = array<i32>} : memref<32x16xf32, #tpu.memory_space<vmem>>, vector<32x16xf32>,
    %7 = vector.extract_strided_slice %0 {offsets = [0, 8], sizes = [32, 8], strides = [1, 1]} : vector<32x16xf32> to vector<32x8xf32>
    %8 = vector.extract_strided_slice %2 {offsets = [0, 0], sizes = [1, 8], strides = [1, 1]} : vector<8x8xf32> to vector<1x8xf32>
    %9 = vector.broadcast %8 : vector<1x8xf32> to vector<32x8xf32>
    %10 = arith.mulf %7, %9 : vector<32x8xf32>
    %c0_7 = arith.constant 0 : index
    %c0_8 = arith.constant 0 : index
    %11 = vector.load %arg5[%c0_7, %c0_8] : memref<32x8xf32, #tpu.memory_space<vmem>>, vector<32x8xf32>
    tpu.vector_store %arg5[%c0_7, %c0_8], %10 {strides = array<i32>} : memref<32x8xf32, #tpu.memory_space<vmem>>, vector<32x8xf32>,
    return
  }
  func.func @transform_0(%arg0: i32) -> (i32, i32) {
    %c0_i32 = arith.constant 0 : i32
    %c0_i32_0 = arith.constant 0 : i32
    return %arg0, %c0_i32 : i32, i32
  }
  func.func @transform_1(%arg0: i32) -> (i32, i32) {
    %c0_i32 = arith.constant 0 : i32
    %c0_i32_0 = arith.constant 0 : i32
    %c0_i32_1 = arith.constant 0 : i32
    return %c0_i32, %c0_i32_0 : i32, i32
  }
  func.func @transform_2(%arg0: i32) -> (i32, i32) {
    %c0_i32 = arith.constant 0 : i32
    %c0_i32_0 = arith.constant 0 : i32
    %c0_i32_1 = arith.constant 0 : i32
    return %c0_i32, %c0_i32_0 : i32, i32
  }
  func.func @transform_3(%arg0: i32) -> (i32, i32) {
    %c0_i32 = arith.constant 0 : i32
    %c0_i32_0 = arith.constant 0 : i32
    return %arg0, %c0_i32 : i32, i32
  }
  func.func @transform_4(%arg0: i32) -> (i32, i32) {
    %c0_i32 = arith.constant 0 : i32
    %c0_i32_0 = arith.constant 0 : i32
    return %arg0, %c0_i32 : i32, i32
  }
}

</mosaic_0001>

<bundles_post_ra>
// kernel: tpu_custom_call.1
= control target key start
LH: loop header
LB: loop body
LE: loop exit
PB: predicated region body
PF: predicated region fallthrough
CT: control target
= control target key end

     0   :  { %s415_s15 = smov 0   ;;  %s446_s0 = inlined_call_operand.vmem [shape: f32[64,16], index: 0, kind: input, shape index: {}]   ;;  %s447_s1 = inlined_call_operand.vmem [shape: f32[8,16], index: 1, kind: input, shape index: {}]   ;;  %s448_s2 = inlined_call_operand.vmem [shape: f32[8,8], index: 2, kind: input, shape index: {}]   ;;  %s449_s3 = inlined_call_operand.vmem [shape: f32[64,16], index: 3, kind: output, shape index: {0}]   ;;  %s450_s4 = inlined_call_operand.vmem [shape: f32[64,8], index: 4, kind: output, shape index: {1}]  }
   0x1 LB: > { %s357_s16 = sadd.s32 4294967295, %s386_s15   ;;  %p361_p0 = scmp.ge.s32.totalorder %s386_s15, 1  ;;  %s386_s15 = sphi %s415_s15, %s15_s15  }
   0x2   : > { %p166_p1 = scmp.lt.s32.totalorder %s386_s15, 3 }
   0x4   : > { %p167_p2 = pnand %p361_p0, %p166_p1 }
   0x5   : > { %s362_s17 = sshll.u32 (!%p167_p2), %s357_s16, 2  ;;  %s388_s29 = smov (!%p167_p2), 8  }
   0x6   : > { %170 = sbr.rel (%p167_p2) target bundleno = 256 (0x100), region = 32  ;;  %p198_p3 = scmp.lt.s32.totalorder (!%p167_p2), %s362_s17, 7 }
   0x7   : > { %s389_s30 = smov (!%p167_p2), 120  }
   0xb   : > { %v221_v0 = vlaneseq  ;;  %v220_v2 = vld [vmem:[%s448_s2] sm:$0xff]  ;;  %s452_s17 = smov (!%p198_p3, %s362_s17), 7  ;;  %vm229_vm0 = vcmask 130048   ;;  %vm262_vm1 = vcmask 64512  }
   0xc   : > { %v219_v3 = vld [vmem:[%s447_s1] sm:$0xff]  ;;  %s429_s22 = sshll.u32 %s452_s17, 3 }
   0xd   : > { %v222_v1 = vshrl.u32 %v221_v0, 7  ;;  %s201_s25 = scalar_lea.vmem %s446_s0, %s429_s22  ;;  %s207_s28 = scalar_lea.vmem %s449_s3, %s429_s22 }
   0xe   : > { %v216_v7 = vld [vmem:[%s201_s25 + $0x8] sm:$0xff]  ;;  %v215_v8 = vld [vmem:[%s201_s25] sm:$0xff]  ;;  %v217_v9 = vld [vmem:[%s201_s25 + $0x10] sm:$0xff]  ;;  %s213_s7 = scalar_lea.vmem %s450_s4, %s429_s22 }
   0xf   : > { %v223_v4 = vsub.s32 0, %v222_v1  ;;  %v218_v13 = vld [vmem:[%s201_s25 + $0x18] sm:$0xff] }
  0x11   : > { %v237_v5 = vrot.slane %v220_v2, %v223_v4  ;;  %v224_v6 = vrot.slane %v219_v3, %v223_v4 }
  0x13   : > { %239 = vrot.lane.b32.xlu0 %v237_v5, %s388_s29  ;;  %v226_v10 = vmul.f32 %v224_v6, %v216_v7  ;;  %v225_v11 = vmul.f32 %v224_v6, %v215_v8  ;;  %v227_v12 = vmul.f32 %v224_v6, %v217_v9  ;;  %v228_v14 = vmul.f32 %v224_v6, %v218_v13 }
  0x15   : > { %230 = vst.msk [vmem:[%s207_s28] sm:$0xff] %vm229_vm0, %v225_v11  ;;  %231 = vst.msk [vmem:[%s207_s28 + $0x8] sm:$0xff] %vm229_vm0, %v226_v10 }
  0x16   : > { %232 = vst.msk [vmem:[%s207_s28 + $0x10] sm:$0xff] %vm229_vm0, %v227_v12  ;;  %233 = vst.msk [vmem:[%s207_s28 + $0x18] sm:$0xff] %vm229_vm0, %v228_v14 }
  0x85   : > { %v240_v15 = vpop.permute.xlu0 %239 }
  0x86   : > { %v243_v16 = vmul.f32 %v240_v15, %v216_v7  ;;  %v242_v17 = vmul.f32 %v240_v15, %v215_v8  ;;  %v244_v18 = vmul.f32 %v240_v15, %v217_v9  ;;  %v245_v19 = vmul.f32 %v240_v15, %v218_v13 }
  0x88   : > { %252 = vrot.lane.b32.xlu1 %v243_v16, %s389_s30  ;;  %250 = vrot.lane.b32.xlu0 %v242_v17, %s389_s30 }
  0x8c   : > { %254 = vrot.lane.b32.xlu1 %v244_v18, %s389_s30  ;;  %256 = vrot.lane.b32.xlu0 %v245_v19, %s389_s30 }
  0xfa   : > { %v253_v20 = vpop.permute.xlu1 %252  ;;  %v251_v21 = vpop.permute.xlu0 %250 }
  0xfb   : > { %263 = vst.msk [vmem:[%s213_s7] sm:$0xff] %vm262_vm1, %v251_v21  ;;  %264 = vst.msk [vmem:[%s213_s7 + $0x8] sm:$0xff] %vm262_vm1, %v253_v20 }
  0xfe   : > { %v255_v22 = vpop.permute.xlu1 %254  ;;  %v257_v23 = vpop.permute.xlu0 %256 }
  0xff   : > { %265 = vst.msk [vmem:[%s213_s7 + $0x10] sm:$0xff] %vm262_vm1, %v255_v22  ;;  %266 = vst.msk [vmem:[%s213_s7 + $0x18] sm:$0xff] %vm262_vm1, %v257_v23 }
 0x100 PF: > { %s15_s15 = sadd.s32 1, %s386_s15  }
 0x101   : > { %p12_p4 = scmp.ge.s32.totalorder %s15_s15, 4  }
 0x103   :  { %14 = sbr.rel (!%p12_p4) target bundleno = 1 (0x1), region = 74 }

</bundles_post_ra>
